<compile_context>
chip_gen: v7x
topology: tpu7x:2x2x1
jax: 0.10.0
libtpu: 0.0.40
codegen_flags: <defaults>
</compile_context>

<pallas_src>
import jax
import jax.numpy as jnp
import numpy as np
from jax.experimental import pallas as pl
from jax.experimental.pallas import tpu as pltpu


def _rfb_kernel(x_ref, p_ref, phi_ref, o_ref):
    # MXU matmul (f32 accumulation) -> bias add -> sin, all on one (tb, tn) tile.
    acc = jnp.dot(x_ref[...], p_ref[...], preferred_element_type=jnp.float32)
    o_ref[...] = jnp.sin(acc + phi_ref[...])


def _round_up(a: int, m: int) -> int:
    return ((a + m - 1) // m) * m


def random_fourier_basis(x, P, phi, nu, *, tile_b=256, tile_n=512,
                         compute_dtype=jnp.bfloat16):
    """sin(x @ P / nu + phi) via a Pallas TPU kernel.

    Args:
      x:   (B, D) float32
      P:   (D, N) float32
      phi: (N,)   float32
      nu:  python float bandwidth
      tile_b: batch tile (rounded up to a multiple of 8)
      tile_n: output-feature tile (rounded up to a multiple of 128)
      compute_dtype: dtype used for the MXU matmul inputs (bf16 by default;
        pass jnp.float32 for bit-accurate projection).
    Returns:
      (B, N) float32
    """
    B, D = x.shape
    Dp, N = P.shape
    assert D == Dp and phi.shape == (N,)

    # Fold 1/nu into the (fixed) weight matrix once — not a per-call prescale.
    P_scaled = (P * (1.0 / float(nu))).astype(jnp.float32)

    # Sublane-aligned batch tile, lane-aligned (multiple of 128) feature tile.
    tile_b = _round_up(int(tile_b), 8)
    tile_n = _round_up(int(tile_n), 128)
    tb = min(tile_b, _round_up(B, 8))
    tn = min(tile_n, _round_up(N, 128))
    B_pad = _round_up(B, tb)
    N_pad = _round_up(N, tn)

    # Pad ragged batch / non-aligned feature dim; padded region is discarded.
    if B_pad != B:
        x = jnp.pad(x, ((0, B_pad - B), (0, 0)))
    if N_pad != N:
        P_scaled = jnp.pad(P_scaled, ((0, 0), (0, N_pad - N)))
        phi = jnp.pad(phi, (0, N_pad - N))

    x_c = x.astype(compute_dtype)
    p_c = P_scaled.astype(compute_dtype)
    phi2d = phi.reshape(1, N_pad).astype(jnp.float32)  # bias stays f32

    grid = (B_pad // tb, N_pad // tn)

    # Raise scoped VMEM only if the double-buffered tiles actually need it
    # (kept below v7x's 64 MiB physical VMEM).
    itemsize = jnp.dtype(compute_dtype).itemsize
    vmem_need = 2 * (tb * D * itemsize      # x tile
                     + D * tn * itemsize    # P tile
                     + tn * 4               # phi tile
                     + tb * tn * 4)         # output tile
    vmem_limit = None
    if vmem_need > 12 * 2**20:
        vmem_limit = min(int(vmem_need * 1.5) + (2 << 20), 56 * 2**20)

    # NOTE: when grid[1] == 1, P/phi are revisited with a constant index_map and
    # are DMA'd only once; single-buffering them (pl.Buffered(1)) would halve
    # their VMEM footprint but is omitted here for lowering portability.
    out = pl.pallas_call(
        _rfb_kernel,
        out_shape=jax.ShapeDtypeStruct((B_pad, N_pad), jnp.float32),
        grid=grid,
        in_specs=[
            # x: tile over batch, full input_size; resident across the N axis.
            pl.BlockSpec((tb, D), lambda i, j: (i, 0)),
            # P: full input_size rows, tile over output features.
            pl.BlockSpec((D, tn), lambda i, j: (0, j)),
            # phi: one bias row per feature tile.
            pl.BlockSpec((1, tn), lambda i, j: (0, j)),
        ],
        out_specs=pl.BlockSpec((tb, tn), lambda i, j: (i, j)),
        compiler_params=pltpu.CompilerParams(
            dimension_semantics=("parallel", "parallel"),
            vmem_limit_bytes=vmem_limit,
        ),
    )(x_c, p_c, phi2d)

    return out[:B, :N]


if __name__ == "__main__":
    # Small, module-consistent shapes: batch=16, input_size=16, n_output=128.
    B, D, N = 16, 16, 128
    nu = 4.0

    key = jax.random.PRNGKey(0)
    kx, kp, kphi = jax.random.split(key, 3)

    x = jax.random.normal(kx, (B, D), dtype=jnp.float32)
    P = jax.random.normal(kp, (D, N), dtype=jnp.float32)
    phi = jax.random.uniform(
        kphi, (N,), dtype=jnp.float32, minval=-np.pi, maxval=np.pi
    )

    ref = jnp.sin(x @ P / nu + phi)

    # f32 MXU path — strict check against the reference.
    out_f32 = jax.block_until_ready(
        random_fourier_basis(x, P, phi, nu, compute_dtype=jnp.float32)
    )
    np.testing.assert_allclose(np.asarray(out_f32), np.asarray(ref),
                               atol=1e-5, rtol=1e-5)

    # bf16 MXU path (default, faster) — loose check (bf16 projection rounding).
    out_bf16 = jax.block_until_ready(random_fourier_basis(x, P, phi, nu))
    np.testing.assert_allclose(np.asarray(out_bf16), np.asarray(ref),
                               atol=3e-2, rtol=3e-2)

    # Ragged / non-aligned shapes — exercises the padding path.
    B2, D2, N2 = 10, 7, 50
    x2 = jax.random.normal(kx, (B2, D2), dtype=jnp.float32)
    P2 = jax.random.normal(kp, (D2, N2), dtype=jnp.float32)
    phi2 = jax.random.uniform(kphi, (N2,), dtype=jnp.float32,
                              minval=-np.pi, maxval=np.pi)
    out2 = jax.block_until_ready(
        random_fourier_basis(x2, P2, phi2, 2.5, compute_dtype=jnp.float32)
    )
    ref2 = jnp.sin(x2 @ P2 / 2.5 + phi2)
    np.testing.assert_allclose(np.asarray(out2), np.asarray(ref2),
                               atol=1e-5, rtol=1e-5)

    print("KERNEL_OK")
</pallas_src>

<mosaic_0001>
module attributes {stable_mosaic.version = 11 : i64} {
  func.func @_rfb_kernel(%arg0: i32, %arg1: i32, %arg2: memref<16x16xf32, #tpu.memory_space<vmem>>, %arg3: memref<16x128xf32, #tpu.memory_space<vmem>>, %arg4: memref<1x128xf32, #tpu.memory_space<vmem>>, %arg5: memref<16x128xf32, #tpu.memory_space<vmem>>) attributes {dimension_semantics = [#tpu.dimension_semantics<parallel>, #tpu.dimension_semantics<parallel>], iteration_bounds = array<i64: 1, 1>, scalar_prefetch = 0 : i64, scratch_operands = 0 : i64, tpu.core_type = #tpu.core_type<tc>, window_params = [{transform_indices = @transform_0, window_bounds = array<i64: 16, 16>}, {transform_indices = @transform_1, window_bounds = array<i64: 16, 128>}, {transform_indices = @transform_2, window_bounds = array<i64: 1, 128>}, {transform_indices = @transform_3, window_bounds = array<i64: 16, 128>}]} {
    %c0 = arith.constant 0 : index
    %c0_0 = arith.constant 0 : index
    %0 = vector.load %arg2[%c0, %c0_0] : memref<16x16xf32, #tpu.memory_space<vmem>>, vector<16x16xf32>
    %c0_1 = arith.constant 0 : index
    %c0_2 = arith.constant 0 : index
    %1 = vector.load %arg3[%c0_1, %c0_2] : memref<16x128xf32, #tpu.memory_space<vmem>>, vector<16x128xf32>
    %cst = arith.constant dense<0.000000e+00> : vector<16x128xf32>
    %2 = tpu.matmul %0, %1, %cst {dimension_numbers = #tpu.dot_dimension_numbers<[1], [0], [0], [1], [0, 0, 1, 1], [], []>} : vector<16x16xf32>, vector<16x128xf32>, vector<16x128xf32> -> vector<16x128xf32>
    %c0_3 = arith.constant 0 : index
    %c0_4 = arith.constant 0 : index
    %3 = vector.load %arg4[%c0_3, %c0_4] : memref<1x128xf32, #tpu.memory_space<vmem>>, vector<1x128xf32>
    %4 = vector.broadcast %3 : vector<1x128xf32> to vector<16x128xf32>
    %5 = arith.addf %2, %4 : vector<16x128xf32>
    %6 = math.sin %5 : vector<16x128xf32>
    %c0_5 = arith.constant 0 : index
    %c0_6 = arith.constant 0 : index
    %7 = vector.load %arg5[%c0_5, %c0_6] : memref<16x128xf32, #tpu.memory_space<vmem>>, vector<16x128xf32>
    tpu.vector_store %arg5[%c0_5, %c0_6], %6 {strides = array<i32>} : memref<16x128xf32, #tpu.memory_space<vmem>>, vector<16x128xf32>,
    return
  }
  func.func @transform_0(%arg0: i32, %arg1: i32) -> (i32, i32) {
    %c0_i32 = arith.constant 0 : i32
    %c0_i32_0 = arith.constant 0 : i32
    return %arg0, %c0_i32 : i32, i32
  }
  func.func @transform_1(%arg0: i32, %arg1: i32) -> (i32, i32) {
    %c0_i32 = arith.constant 0 : i32
    %c0_i32_0 = arith.constant 0 : i32
    return %c0_i32, %arg1 : i32, i32
  }
  func.func @transform_2(%arg0: i32, %arg1: i32) -> (i32, i32) {
    %c0_i32 = arith.constant 0 : i32
    %c0_i32_0 = arith.constant 0 : i32
    return %c0_i32, %arg1 : i32, i32
  }
  func.func @transform_3(%arg0: i32, %arg1: i32) -> (i32, i32) {
    %c0_i32 = arith.constant 0 : i32
    return %arg0, %arg1 : i32, i32
  }
}

</mosaic_0001>

<bundles_post_ra>
// kernel: tpu_custom_call.1
= control target key start
LH: loop header
LB: loop body
LE: loop exit
PB: predicated region body
PF: predicated region fallthrough
CT: control target
= control target key end

     0   :  { %8 = vsyncpa [#allocation3], 0  ;;  %s630_s0 = inlined_call_operand.hbm [shape: f32[16,16], index: 0, kind: input, shape index: {}]   ;;  %s631_s1 = inlined_call_operand.hbm [shape: f32[16,128], index: 1, kind: input, shape index: {}]   ;;  %s632_s2 = inlined_call_operand.vmem [shape: f32[1,128], index: 2, kind: input, shape index: {}]   ;;  %s633_s3 = inlined_call_operand.hbm [shape: f32[16,128], index: 3, kind: output, shape index: {}]  }
   0x1   :  { %9 = vsyncpa [#allocation6], 0 }
   0x2   :  { %10 = vsyncpa [#allocation4], 0  ;;  %s489_s12 = smov [#allocation2]   ;;  %s417_s16 = scalar_lea.hbm %s630_s0, 256 }
   0x3   :  { %s16_s13 = sshll.u32 %s489_s12, 4  ;;  %p418_p0 = scmp.ne.s32.totalorder %s630_s0, %s417_s16  ;;  %s17_s13 = int_to_ptr.vmem [resolvable:$true] %s16_s13 }
   0x4   :  { %p421_p1 = scmp.lt.u32.totalorder %s417_s16, %s630_s0 }
   0x6   :  { %p423_p2 = pnand %p421_p1, %p418_p0 }
   0x8   :  { %426 = shalt.err (!%p423_p2)
}
   0x9   :  { %s427_s21 = scalar_lea.vmem %s17_s13, 256  ;;  %p432_p4 = scmp.lt.s32.totalorder %s17_s13, %s17_s13 }
   0xa   :  { %p428_p3 = scmp.ne.s32.totalorder %s17_s13, %s427_s21  ;;  %p433_p5 = scmp.lt.s32.totalorder %s427_s21, %s427_s21 }
   0xc   :  { %p434_p6 = por %p433_p5, %p432_p4 }
   0xe   :  { %p435_p7 = pnand %p434_p6, %p428_p3 }
  0x10   :  { %438 = shalt.err (!%p435_p7)
}
  0x11   :  { %s490_s22 = smov 128   ;;  %s491_s23 = smov 8  }
  0x12   :  { %22 = dma.hbm_to_vmem [thread:$0]  %s630_s0, 256, %s17_s13, [#allocation3], %s490_s22, %s490_s22, %s491_s23  }
  0x13   :  { %s492_s26 = smov [#allocation5]   ;;  %s439_s30 = scalar_lea.hbm %s631_s1, 256 }
  0x14   :  { %s28_s27 = sshll.u32 %s492_s26, 4  ;;  %p440_p8 = scmp.ne.s32.totalorder %s631_s1, %s439_s30  ;;  %s29_s27 = int_to_ptr.vmem [resolvable:$true] %s28_s27 }
  0x15   :  { %p443_p9 = scmp.lt.u32.totalorder %s439_s30, %s631_s1 }
  0x17   :  { %p445_p10 = pnand %p443_p9, %p440_p8 }
  0x19   :  { %448 = shalt.err (!%p445_p10)
}
  0x1a   :  { %s449_s8 = scalar_lea.vmem %s29_s27, 256  ;;  %p454_p12 = scmp.lt.s32.totalorder %s29_s27, %s29_s27 }
  0x1b   :  { %p450_p11 = scmp.ne.s32.totalorder %s29_s27, %s449_s8  ;;  %p455_p13 = scmp.lt.s32.totalorder %s449_s8, %s449_s8 }
  0x1d   :  { %p456_p0 = por %p455_p13, %p454_p12 }
  0x1f   :  { %p457_p1 = pnand %p456_p0, %p450_p11 }
  0x21   :  { %460 = shalt.err (!%p457_p1)
}
  0x22   :  { %34 = dma.hbm_to_vmem [thread:$0]  %s631_s1, 256, %s29_s27, [#allocation6], %s490_s22, %s490_s22, %s491_s23  }
  0x23   :  { %483 = dma.done.wait [#allocation3], 256  }
  0x24   :  { %484 = vsyncadd [#allocation3], 4294967040 }
  0x25   :  { %485 = dma.done.wait [#allocation6], 256  }
  0x26   :  { %486 = vsyncadd [#allocation6], 4294967040  ;;  %vm54_vm0 = vcmask 130048   ;;  %v45_v0 = vld [vmem:[#allocation5] sm:$0xff]  ;;  %v46_v1 = vld [vmem:[#allocation5 + $0x8] sm:$0xff]  ;;  %s499_s1 = smov [#allocation7]  }
  0x27   :  { %v43_v2 = vld [vmem:[#allocation2] sm:$0xff]  ;;  %v386_v3 = vpack.c.bf16 %v46_v1, %v45_v0  ;;  %v44_v4 = vld [vmem:[#allocation2 + $0x8] sm:$0xff]  ;;  %v493_v30 = vmov 683565275   ;;  %v494_v34 = vmov 2475754826  }
  0x28   :  { %383 = vmatprep.mubr.msk.f32.mxu0 %vm54_vm0, %v43_v2  ;;  %v364_v5 = vld [vmem:[%s632_s2] ss:$0 sm:$0xff]  ;;  %v495_v36 = vmov 2131351028   ;;  %v496_v38 = vmov 2102212464  }
  0x29   :  { %387 = vmatprep.subr.bf16.mxu0 %v386_v3  ;;  %v497_v40 = vmov 920167782   ;;  %v498_v47 = vmov 1326507024   ;;  %s351_s2 = sshll.u32 %s499_s1, 4  ;;  %s352_s2 = int_to_ptr.vmem [resolvable:$true] %s351_s2 }
  0x2a   :  { %389 = vmatpush3.bf16.msra.mxu0 %v386_v3  ;;  %s461_s12 = scalar_lea.vmem %s352_s2, 256  ;;  %p466_p3 = scmp.lt.s32.totalorder %s352_s2, %s352_s2 }
  0x2b   :  { %p462_p2 = scmp.ne.s32.totalorder %s352_s2, %s461_s12  ;;  %p467_p4 = scmp.lt.s32.totalorder %s461_s12, %s461_s12 }
  0x2d   :  { %384 = vmatmul.mubr.msk.f32.vlgmr.msra.gmra.mrb[0].mxu0 %vm54_vm0, %v44_v4  ;;  %p468_p5 = por %p467_p4, %p466_p3 }
  0x2f   :  { %p469_p6 = pnand %p468_p5, %p462_p2 }
 0x100   :  { %v385_v6 = vpop.f32.mrb[0].mxu0 }
 0x101   :  { %v553_v7 = vadd.f32 %v385_v6, %v364_v5  ;;  %v127_v8 = vpop.f32.mrb[1].mxu0 }
 0x102   :  { %v555_v9 = vadd.f32 %v364_v5, %v127_v8 }
 0x103   :  { %v240_v10 = vand.u32 2147483647, %v553_v7  ;;  %v243_v11 = vand.u32 2139095040, %v553_v7  ;;  %vm242_vm15 = vcmp.lt.s32.totalorder %v553_v7, 0 }
 0x104   :  { %v139_v12 = vand.u32 2139095040, %v555_v9  ;;  %v136_v15 = vand.u32 2147483647, %v555_v9 }
 0x105   :  { %v244_v13 = vshrl.u32 %v243_v11, 23  ;;  %v247_v14 = vand.u32 8388607, %v240_v10  ;;  %vm241_vm0 = vcmp.le.f32.partialorder %v240_v10, 0.7853982 }
 0x106   :  { %v140_v16 = vshrl.u32 %v139_v12, 23  ;;  %v565_v21 = vand.u32 8388607, %v136_v15 }
 0x107   :  { %v371_v17 = vadd.s32 4294967169, %v244_v13  ;;  %v248_v20 = vor.u32 8388608, %v247_v14 }
 0x108   :  { %v367_v18 = vadd.s32 4294967169, %v140_v16  ;;  %v144_v28 = vor.u32 8388608, %v565_v21 }
 0x109   :  { %v250_v19 = vadd.s32 1, %v371_v17  ;;  %v567_v27 = vshll.u32 %v248_v20, 8 }
 0x10a   :  { %v146_v22 = vadd.s32 1, %v367_v18 }
 0x10b   :  { %vm251_vm1 = vcmp.gt.s32.totalorder %v250_v19, 0 }
 0x10c   :  { %v252_v23 = vsel %vm251_vm1, %v250_v19, 0  ;;  %vm147_vm2 = vcmp.gt.s32.totalorder %v146_v22, 0  ;;  %vm138_vm1 = vcmp.lt.s32.totalorder %v555_v9, 0 }
 0x10d   :  { %v253_v24 = vshrl.u32 %v252_v23, 5  ;;  %v254_v25 = vand.u32 31, %v252_v23  ;;  %v148_v26 = vsel %vm147_vm2, %v146_v22, 0  ;;  %v184_v22 = vshll.u32 %v144_v28, 8 }
 0x10e   :  { %v570_v32 = vshrl.u32 %v148_v26, 5  ;;  %v150_v33 = vand.u32 31, %v148_v26  ;;  %vm137_vm2 = vcmp.le.f32.partialorder %v136_v15, 0.7853982 }
 0x10f   :  { %v255_v29 = vsub.s32 32, %v254_v25  ;;  %v257_v31 = vshll.u32 %v493_v30, %v254_v25  ;;  %v260_v35 = vshll.u32 %v494_v34, %v254_v25  ;;  %v263_v37 = vshll.u32 %v495_v36, %v254_v25 }
 0x110   :  { %v266_v39 = vshll.u32 %v496_v38, %v254_v25  ;;  %v269_v41 = vshll.u32 %v497_v40, %v254_v25  ;;  %vm272_vm3 = vcmp.lt.s32.totalorder %v253_v24, 1  ;;  %vm273_vm4 = vcmp.lt.s32.totalorder %v253_v24, 2 }
 0x111   :  { %v258_v42 = vshrl.u32 %v494_v34, %v255_v29  ;;  %v261_v43 = vshrl.u32 %v495_v36, %v255_v29  ;;  %v264_v44 = vshrl.u32 %v496_v38, %v255_v29  ;;  %v256_v45 = vshrl.u32 %v493_v30, %v255_v29 }
 0x112   :  { %v267_v46 = vshrl.u32 %v497_v40, %v255_v29  ;;  %v270_v48 = vshrl.u32 %v498_v47, %v255_v29  ;;  %v151_v52 = vsub.s32 32, %v150_v33  ;;  %vm274_vm5 = vcmp.lt.s32.totalorder %v253_v24, 3 }
 0x113   :  { %v259_v49 = vor.u32 %v258_v42, %v257_v31  ;;  %v262_v50 = vor.u32 %v261_v43, %v260_v35  ;;  %v265_v51 = vor.u32 %v264_v44, %v263_v37  ;;  %vm275_vm6 = vcmp.lt.s32.totalorder %v253_v24, 4 }
 0x114   :  { %v268_v53 = vor.u32 %v267_v46, %v266_v39  ;;  %v271_v54 = vor.u32 %v270_v48, %v269_v41  ;;  %v153_v62 = vshll.u32 %v493_v30, %v150_v33  ;;  %v154_v1 = vshrl.u32 %v494_v34, %v151_v52 }
 0x115   :  { %v276_v55 = vsel %vm272_vm3, %v256_v45, %v259_v49  ;;  %v277_v56 = vsel %vm275_vm6, %v265_v51, 2102212464  ;;  %v280_v57 = vsel %vm272_vm3, %v259_v49, %v262_v50  ;;  %v284_v58 = vsel %vm272_vm3, %v262_v50, %v265_v51 }
 0x116   :  { %v278_v59 = vsel %vm274_vm5, %v262_v50, %v277_v56  ;;  %v281_v60 = vsel %vm275_vm6, %v268_v53, 920167782  ;;  %v285_v61 = vsel %vm275_vm6, %v271_v54, 1326507024  ;;  %v156_v2 = vshll.u32 %v494_v34, %v150_v33 }
 0x117   :  { %v282_v63 = vsel %vm274_vm5, %v265_v51, %v281_v60  ;;  %v286_v0 = vsel %vm274_vm5, %v268_v53, %v285_v61  ;;  %v279_v3 = vsel %vm273_vm4, %v276_v55, %v278_v59  ;;  %v157_v6 = vshrl.u32 %v495_v36, %v151_v52 }
 0x118   :  { %v283_v4 = vsel %vm273_vm4, %v280_v57, %v282_v63  ;;  %v287_v5 = vsel %vm273_vm4, %v284_v58, %v286_v0  ;;  %v155_v14 = vor.u32 %v154_v1, %v153_v62  ;;  %v159_v17 = vshll.u32 %v495_v36, %v150_v33 }
 0x119   :  { %v579_v8 = vmul.u32.u64.low %v567_v27, %v287_v5  ;;  %v580_v11 = vmul.u32.u64.high %v567_v27, %v287_v5, %v579_v8  ;;  %v583_v12 = vmul.u32.u64.low %v567_v27, %v283_v4  ;;  %v584_v13 = vmul.u32.u64.high %v567_v27, %v283_v4, %v583_v12 }
 0x11a   :  { %v158_v16 = vor.u32 %v157_v6, %v156_v2  ;;  %v160_v18 = vshrl.u32 %v496_v38, %v151_v52  ;;  %v162_v19 = vshll.u32 %v496_v38, %v150_v33  ;;  %v163_v20 = vshrl.u32 %v497_v40, %v151_v52 }
 0x11b   :  { %v166_v21 = vshrl.u32 %v498_v47, %v151_v52  ;;  %v295_v23 = vmul.u32 %v567_v27, %v279_v3  ;;  %v152_v24 = vshrl.u32 %v493_v30, %v151_v52  ;;  %v165_v26 = vshll.u32 %v497_v40, %v150_v33 }
 0x11c   :  { %v161_v25 = vor.u32 %v160_v18, %v159_v17  ;;  %vm297_vm7 = vc.u32 %v580_v11, %v583_v12  ;;  %v298_v29 = vadd.s32 1, %v584_v13  ;;  %v164_v31 = vor.u32 %v163_v20, %v162_v19 }
 0x11d   :  { %vm168_vm8 = vcmp.lt.s32.totalorder %v570_v32, 1  ;;  %v167_v34 = vor.u32 %v166_v21, %v165_v26  ;;  %vm170_vm9 = vcmp.lt.s32.totalorder %v570_v32, 3  ;;  %vm171_vm10 = vcmp.lt.s32.totalorder %v570_v32, 4 }
 0x11e   :  { %v176_v35 = vsel %vm168_vm8, %v155_v14, %v158_v16  ;;  %v299_v28 = vsel %vm297_vm7, %v298_v29, %v584_v13  ;;  %v173_v36 = vsel %vm171_vm10, %v161_v25, 2102212464  ;;  %v177_v27 = vsel %vm171_vm10, %v164_v31, 920167782 }
 0x11f   :  { %v180_v30 = vsel %vm168_vm8, %v158_v16, %v161_v25  ;;  %v300_v37 = vadd.s32 %v299_v28, %v295_v23  ;;  %vm169_vm11 = vcmp.lt.s32.totalorder %v570_v32, 2  ;;  %v178_v33 = vsel %vm170_vm9, %v161_v25, %v177_v27 }
 0x120   :  { %v181_v38 = vsel %vm171_vm10, %v167_v34, 1326507024  ;;  %v172_v39 = vsel %vm168_vm8, %v152_v24, %v155_v14  ;;  %v174_v40 = vsel %vm170_vm9, %v158_v16, %v173_v36  ;;  %v179_v41 = vsel %vm169_vm11, %v176_v35, %v178_v33 }
 0x121   :  { %v182_v42 = vsel %vm170_vm9, %v164_v31, %v181_v38  ;;  %v301_v43 = vadd.s32 536870912, %v300_v37  ;;  %v594_v45 = vmul.u32.u64.low %v184_v22, %v179_v41  ;;  %v595_v46 = vmul.u32.u64.high %v184_v22, %v179_v41, %v594_v45 }
 0x122   :  { %v183_v44 = vsel %vm169_vm11, %v180_v30, %v182_v42  ;;  %v175_v50 = vsel %vm169_vm11, %v172_v39, %v174_v40  ;;  %v296_v2 = vadd.s32 %v583_v12, %v580_v11  ;;  %vm332_vm6 = vweird.f32 %v553_v7 }
 0x123   :  { %v597_v47 = vmul.u32.u64.low %v184_v22, %v183_v44  ;;  %v598_v48 = vmul.u32.u64.high %v184_v22, %v183_v44, %v597_v47  ;;  %v302_v49 = vshrl.u32 %v301_v43, 30  ;;  %v194_v52 = vadd.s32 1, %v595_v46 }
 0x124   :  { %v191_v32 = vmul.u32 %v184_v22, %v175_v50  ;;  %vm228_vm10 = vweird.f32 %v555_v9 }
 0x125   :  { %v303_v51 = vshll.u32 %v302_v49, 30  ;;  %vm193_vm12 = vc.u32 %v598_v48, %v594_v45  ;;  %v192_v23 = vadd.s32 %v594_v45, %v598_v48  ;;  %v326_v12 = vsub.s32 4, %v302_v49 }
 0x126   :  { %v195_v54 = vsel %vm193_vm12, %v194_v52, %v595_v46 }
 0x127   :  { %v304_v53 = vsub.s32 %v300_v37, %v303_v51  ;;  %v196_v55 = vadd.s32 %v195_v54, %v191_v32  ;;  %v327_v27 = vsel %vm242_vm15, %v326_v12, %v302_v49 }
 0x128   :  { %v329_v39 = vsel %vm241_vm0, 0, %v327_v27 }
 0x129   :  { %v306_v56 = vsub.s32 0, %v304_v53  ;;  %v197_v57 = vadd.s32 536870912, %v196_v55  ;;  %v333_v42 = vadd.s32 3, %v329_v39 }
 0x12b   :  { %v372_v58 = vmin.u32 %v306_v56, %v304_v53  ;;  %v198_v59 = vshrl.u32 %v197_v57, 30  ;;  %v334_v46 = vand.u32 3, %v333_v42 }
 0x12d   :  { %v308_v60 = vclz %v372_v58  ;;  %v199_v61 = vshll.u32 %v198_v59, 30  ;;  %v222_v41 = vsub.s32 4, %v198_v59  ;;  %vm339_vm3 = vcmp.eq.s32.totalorder %v334_v46, 2 }
 0x12e   :  { %vm336_vm4 = vcmp.eq.s32.totalorder %v334_v46, 0  ;;  %vm335_vm5 = vcmp.lt.s32.totalorder %v334_v46, 2 }
 0x12f   :  { %v373_v62 = vadd.s32 4294967294, %v308_v60  ;;  %v200_v63 = vsub.s32 %v196_v55, %v199_v61  ;;  %v223_v44 = vsel %vm138_vm1, %v222_v41, %v198_v59 }
 0x130   :  { %v225_v48 = vsel %vm137_vm2, 0, %v223_v44 }
 0x131   :  { %vm374_vm13 = vcmp.lt.s32.totalorder %v373_v62, 0  ;;  %v202_v1 = vsub.s32 0, %v200_v63  ;;  %v229_v52 = vadd.s32 3, %v225_v48 }
 0x132   :  { %v311_v0 = vsel %vm374_vm13, 0, %v373_v62 }
 0x133   :  { %v312_v3 = vsub.s32 32, %v311_v0  ;;  %v316_v4 = vsub.s32 4294967266, %v311_v0  ;;  %v368_v5 = vmin.u32 %v202_v1, %v200_v63  ;;  %v313_v6 = vshll.u32 %v304_v53, %v311_v0 }
 0x134   :  { %v230_v55 = vand.u32 3, %v229_v52 }
 0x135   :  { %v314_v8 = vshrl.u32 %v296_v2, %v312_v3  ;;  %v317_v13 = vadd.s32 127, %v316_v4  ;;  %v204_v14 = vclz %v368_v5 }
 0x136   :  { %vm235_vm7 = vcmp.eq.s32.totalorder %v230_v55, 2  ;;  %vm232_vm8 = vcmp.eq.s32.totalorder %v230_v55, 0  ;;  %vm231_vm9 = vcmp.lt.s32.totalorder %v230_v55, 2 }
 0x137   :  { %v315_v16 = vor.u32 %v314_v8, %v313_v6  ;;  %v318_v17 = vshll.u32 %v317_v13, 23  ;;  %v369_v18 = vadd.s32 4294967294, %v204_v14 }
 0x139   :  { %v319_v19 = vor.u32 4788187, %v318_v17  ;;  %vm370_vm14 = vcmp.lt.s32.totalorder %v369_v18, 0  ;;  %v322_v21 = vcvt.s32.f32 %v315_v16 }
 0x13a   :  { %v207_v22 = vsel %vm370_vm14, 0, %v369_v18 }
 0x13b   :  { %v320_v20 = vand.u32 2147483647, %v319_v19  ;;  %v208_v24 = vsub.s32 32, %v207_v22  ;;  %v212_v25 = vsub.s32 4294967266, %v207_v22  ;;  %v209_v26 = vshll.u32 %v200_v63, %v207_v22 }
 0x13d   :  { %v323_v11 = vmul.f32 %v322_v21, %v320_v20  ;;  %v210_v29 = vshrl.u32 %v192_v23, %v208_v24  ;;  %v213_v31 = vadd.s32 127, %v212_v25 }
 0x13f   :  { %v324_v34 = vxor.u32 2147483648, %v323_v11  ;;  %v211_v35 = vor.u32 %v210_v29, %v209_v26  ;;  %v214_v28 = vshll.u32 %v213_v31, 23 }
 0x141   :  { %v325_v36 = vsel %vm242_vm15, %v324_v34, %v323_v11  ;;  %v215_v37 = vor.u32 4788187, %v214_v28  ;;  %v218_v38 = vcvt.s32.f32 %v211_v35 }
 0x142   :  { %v328_v30 = vsel %vm241_vm0, %v553_v7, %v325_v36 }
 0x143   :  { %409 = vcosq.f32 %v328_v30  ;;  %v216_v33 = vand.u32 2147483647, %v215_v37 }
 0x144   :  { %411 = vsinq.f32 %v328_v30 }
 0x145   :  { %v219_v40 = vmul.f32 %v218_v38, %v216_v33 }
 0x147   :  { %v220_v43 = vxor.u32 2147483648, %v219_v40 }
 0x149   :  { %v221_v10 = vsel %vm138_vm1, %v220_v43, %v219_v40 }
 0x14a   :  { %v224_v45 = vsel %vm137_vm2, %v555_v9, %v221_v10 }
 0x14b   :  { %413 = vcosq.f32 %v224_v45 }
 0x14c   :  { %415 = vsinq.f32 %v224_v45 }
 0x14d   :  { %v410_v47 = vpop.eup %409 }
 0x14e   :  { %v412_v49 = vpop.eup %411  ;;  %v340_v50 = vxor.u32 2147483648, %v410_v47 }
 0x14f   :  { %v337_v51 = vxor.u32 2147483648, %v412_v49 }
 0x150   :  { %v341_v32 = vsel %vm339_vm3, %v340_v50, %v412_v49 }
 0x151   :  { %v338_v53 = vsel %vm336_vm4, %v410_v47, %v337_v51 }
 0x152   :  { %v342_v15 = vsel %vm335_vm5, %v338_v53, %v341_v32 }
 0x153   :  { %v343_v54 = vsel %vm332_vm6, nan, %v342_v15 }
 0x154   :  { %345 = vst [vmem:[#allocation7 + $0x8] sm:$0xff] %v343_v54 }
 0x155   :  { %v414_v56 = vpop.eup %413 }
 0x156   :  { %v416_v57 = vpop.eup %415  ;;  %v236_v58 = vxor.u32 2147483648, %v414_v56 }
 0x157   :  { %v233_v59 = vxor.u32 2147483648, %v416_v57 }
 0x158   :  { %v237_v60 = vsel %vm235_vm7, %v236_v58, %v416_v57 }
 0x159   :  { %v234_v61 = vsel %vm232_vm8, %v414_v56, %v233_v59 }
 0x15a   :  { %v238_v62 = vsel %vm231_vm9, %v234_v61, %v237_v60 }
 0x15b   :  { %v239_v7 = vsel %vm228_vm10, nan, %v238_v62 }
 0x15c   :  { %344 = vst [vmem:[#allocation7] sm:$0xff] %v239_v7 }
 0x15d   :  { %472 = shalt.err (!%p469_p6)
}
 0x15e   :  { %s473_s15 = scalar_lea.hbm %s633_s3, 256 }
 0x15f   :  { %p474_p7 = scmp.ne.s32.totalorder %s633_s3, %s473_s15  ;;  %p477_p8 = scmp.lt.u32.totalorder %s473_s15, %s633_s3 }
 0x161   :  { %p479_p9 = pnand %p477_p8, %p474_p7 }
 0x163   :  { %482 = shalt.err (!%p479_p9)
}
 0x164   :  { %357 = dma.vmem_to_hbm [thread:$0]  %s352_s2, 256, %s633_s3, [#allocation4], %s490_s22, %s490_s22, %s491_s23  }
 0x165   :  { %487 = dma.done.wait [#allocation4], 256  }
 0x166   :  { %488 = vsyncadd [#allocation4], 4294967040 }
 0x167   :  { %361 = vsyncpa [#allocation3], 1 }
 0x168   :  { %362 = vsyncpa [#allocation6], 1 }
 0x169   :  { %363 = vsyncpa [#allocation4], 1 }

</bundles_post_ra>
